<compile_context>
chip_gen: v5e
topology: v5e:2x2
jax: 0.10.0
libtpu: 0.0.40
codegen_flags: <defaults>
</compile_context>

<pallas_src>
import jax
import jax.numpy as jnp
from jax import lax
from jax.experimental import pallas as pl
from jax.experimental.pallas import tpu as pltpu


_PAD1 = 1.0e8    # sentinel coordinate for padded xyz1 points
_PAD2 = -1.0e8   # sentinel coordinate for padded xyz2 points


def _round_up(x, k):
    return ((x + k - 1) // k) * k


def _chamfer_kernel(x1_ref, x2_ref, d1_ref, d2p_ref):
    m_idx = pl.program_id(2)

    x1a = x1_ref[0]          # (TN, 8)   augmented xyz1 rows (sublanes)
    x2a = x2_ref[0]          # (8, TM)   augmented xyz2 cols (lane-dense)

    # Squared distances on the MXU: ||p||^2 + ||q||^2 - 2 p.q
    dist = jnp.dot(
        x1a, x2a,
        preferred_element_type=jnp.float32,
        precision=lax.Precision.HIGHEST,
    )                                                       # (TN, TM)

    # ---- dist1: running min over xyz2 (lane axis), accumulated over m ----
    # Clamp after the (monotone) min; min_i max(d_i, 0) == max(min_i d_i, 0).
    row_min = jnp.maximum(jnp.min(dist, axis=1, keepdims=True), 0.0)   # (TN, 1)

    @pl.when(m_idx == 0)
    def _():
        d1_ref[0, :, :] = row_min

    @pl.when(m_idx > 0)
    def _():
        d1_ref[0, :, :] = jnp.minimum(d1_ref[0, :, :], row_min)

    # ---- dist2 partials: min over this n-block's xyz1 rows (sublanes) ----
    d2p_ref[0, 0, 0, :] = jnp.maximum(jnp.min(dist, axis=0), 0.0)      # (TM,)


def chamfer_distance(xyz1, xyz2, *, tile_n=1024, tile_m=2048):
    """Pallas Chamfer distance (forward).

    Args:
      xyz1: (B, N, 3) float32
      xyz2: (B, M, 3) float32
    Returns:
      dist1: (B, N) float32 -- min over xyz2 of squared distance
      dist2: (B, M) float32 -- min over xyz1 of squared distance
    """
    B, N, C = xyz1.shape
    B2, M, C2 = xyz2.shape
    assert C == 3 and C2 == 3 and B == B2, "point clouds must be (B, *, 3)"

    xyz1 = xyz1.astype(jnp.float32)
    xyz2 = xyz2.astype(jnp.float32)

    # --- tile sizes: TN multiple of 8 (sublanes), TM multiple of 128 (lanes) ---
    if N <= tile_n:
        if B == 1 and N > 8:
            # Keep >= 2 parallel grid units along n so both TensorCores on
            # multi-core parts (v7x) get work even for a single cloud.
            TN = _round_up(-(-N // 2), 8)
        else:
            TN = _round_up(N, 8)
    else:
        TN = tile_n
    N_pad = _round_up(N, TN)

    if M <= tile_m:
        TM = _round_up(M, 128)
    else:
        TM = tile_m
    M_pad = _round_up(M, TM)

    nN = N_pad // TN
    nM = M_pad // TM

    # --- sentinel padding: padded points are far away, never win a min -------
    if N_pad != N:
        xyz1 = jnp.pad(xyz1, ((0, 0), (0, N_pad - N), (0, 0)), constant_values=_PAD1)
    if M_pad != M:
        xyz2 = jnp.pad(xyz2, ((0, 0), (0, M_pad - M), (0, 0)), constant_values=_PAD2)

    # --- augmented operands for the MXU inner-product form -------------------
    n1 = jnp.sum(xyz1 * xyz1, axis=-1, keepdims=True)          # (B, N_pad, 1)
    n2 = jnp.sum(xyz2 * xyz2, axis=-1, keepdims=True)          # (B, M_pad, 1)
    x1_aug = jnp.concatenate(
        [-2.0 * xyz1, n1, jnp.ones_like(n1), jnp.zeros((B, N_pad, 3), jnp.float32)],
        axis=-1)                                               # (B, N_pad, 8)
    x2_aug = jnp.concatenate(
        [xyz2, jnp.ones_like(n2), n2, jnp.zeros((B, M_pad, 3), jnp.float32)],
        axis=-1)                                               # (B, M_pad, 8)
    x2_aug = jnp.transpose(x2_aug, (0, 2, 1))                  # (B, 8, M_pad)

    d1_out, d2_partial = pl.pallas_call(
        _chamfer_kernel,
        out_shape=(
            jax.ShapeDtypeStruct((B, N_pad, 1), jnp.float32),
            jax.ShapeDtypeStruct((B, nN, 1, M_pad), jnp.float32),
        ),
        grid_spec=pltpu.PrefetchScalarGridSpec(
            num_scalar_prefetch=0,
            grid=(B, nN, nM),
            in_specs=[
                pl.BlockSpec((1, TN, 8), lambda b, n, m: (b, n, 0)),
                pl.BlockSpec((1, 8, TM), lambda b, n, m: (b, 0, m)),
            ],
            out_specs=[
                pl.BlockSpec((1, TN, 1), lambda b, n, m: (b, n, 0)),
                pl.BlockSpec((1, 1, 1, TM), lambda b, n, m: (b, n, 0, m)),
            ],
        ),
        compiler_params=pltpu.CompilerParams(
            dimension_semantics=("parallel", "parallel", "arbitrary"),
            vmem_limit_bytes=48 * 1024 * 1024,
        ),
    )(x1_aug, x2_aug)

    d1 = d1_out.reshape(B, N_pad)[:, :N]
    d2 = jnp.min(d2_partial.reshape(B, nN, M_pad), axis=1)[:, :M]
    return d1, d2


def _chamfer_reference(xyz1, xyz2):
    # Pure-JAX reference mirroring the PyTorch module.
    diff = xyz1[:, :, None, :] - xyz2[:, None, :, :]    # (B, N, M, 3)
    dist = jnp.sum(diff ** 2, axis=-1)                  # (B, N, M)
    return jnp.min(dist, axis=2), jnp.min(dist, axis=1)


def _check(xyz1, xyz2, **kw):
    d1, d2 = chamfer_distance(xyz1, xyz2, **kw)
    jax.block_until_ready((d1, d2))
    r1, r2 = _chamfer_reference(xyz1, xyz2)
    B, N, _ = xyz1.shape
    _, M, _ = xyz2.shape
    assert d1.shape == (B, N) and d2.shape == (B, M)
    assert jnp.allclose(d1, r1, atol=1e-4, rtol=1e-4)
    assert jnp.allclose(d2, r2, atol=1e-4, rtol=1e-4)


if __name__ == "__main__":
    key = jax.random.PRNGKey(0)
    k1, k2, k3, k4, k5, k6 = jax.random.split(key, 6)

    # Case 1: small ragged sizes (exercises sentinel padding on both axes).
    B, N, M = 2, 100, 75
    xyz1 = jax.random.normal(k1, (B, N, 3), dtype=jnp.float32)
    xyz2 = jax.random.normal(k2, (B, M, 3), dtype=jnp.float32)
    _check(xyz1, xyz2)

    # Case 2: B == 1 single-tile cloud (exercises the 2-way n split for v7x).
    B, N, M = 1, 520, 1100
    xyz1 = jax.random.normal(k3, (B, N, 3), dtype=jnp.float32)
    xyz2 = jax.random.normal(k4, (B, M, 3), dtype=jnp.float32)
    _check(xyz1, xyz2)

    # Case 3: forced small tiles -> multiple tiles along both n and m
    # (exercises the running-min accumulation over m and the partial-min
    #  combine over n, with ragged padding on both sides).
    B, N, M = 1, 300, 333
    xyz1 = jax.random.normal(k5, (B, N, 3), dtype=jnp.float32)
    xyz2 = jax.random.normal(k6, (B, M, 3), dtype=jnp.float32)
    _check(xyz1, xyz2, tile_n=128, tile_m=128)

    print("KERNEL_OK")
</pallas_src>

<mosaic_0001>
module attributes {stable_mosaic.version = 11 : i64} {
  func.func @_chamfer_kernel(%arg0: i32, %arg1: i32, %arg2: i32, %arg3: memref<1x104x8xf32, #tpu.memory_space<vmem>>, %arg4: memref<1x8x128xf32, #tpu.memory_space<vmem>>, %arg5: memref<1x104x1xf32, #tpu.memory_space<vmem>>, %arg6: memref<1x1x1x128xf32, #tpu.memory_space<vmem>>) attributes {dimension_semantics = [#tpu.dimension_semantics<parallel>, #tpu.dimension_semantics<parallel>, #tpu.dimension_semantics<arbitrary>], iteration_bounds = array<i64: 2, 1, 1>, scalar_prefetch = 0 : i64, scratch_operands = 0 : i64, tpu.core_type = #tpu.core_type<tc>, window_params = [{transform_indices = @transform_0, window_bounds = array<i64: 1, 104, 8>}, {transform_indices = @transform_1, window_bounds = array<i64: 1, 8, 128>}, {transform_indices = @transform_2, window_bounds = array<i64: 1, 104, 1>}, {transform_indices = @transform_3, window_bounds = array<i64: 1, 1, 1, 128>}]} {
    %c0 = arith.constant 0 : index
    %c0_0 = arith.constant 0 : index
    %c0_1 = arith.constant 0 : index
    %0 = vector.load %arg3[%c0, %c0_0, %c0_1] : memref<1x104x8xf32, #tpu.memory_space<vmem>>, vector<1x104x8xf32>
    %1 = vector.shape_cast %0 : vector<1x104x8xf32> to vector<104x8xf32>
    %c0_2 = arith.constant 0 : index
    %c0_3 = arith.constant 0 : index
    %c0_4 = arith.constant 0 : index
    %2 = vector.load %arg4[%c0_2, %c0_3, %c0_4] : memref<1x8x128xf32, #tpu.memory_space<vmem>>, vector<1x8x128xf32>
    %3 = vector.shape_cast %2 : vector<1x8x128xf32> to vector<8x128xf32>
    %cst = arith.constant dense<0.000000e+00> : vector<104x128xf32>
    %4 = tpu.matmul %1, %3, %cst {dimension_numbers = #tpu.dot_dimension_numbers<[1], [0], [0], [1], [0, 0, 1, 1], [], []>, precision = #tpu.contract_precision<fp32>} : vector<104x8xf32>, vector<8x128xf32>, vector<104x128xf32> -> vector<104x128xf32>
    %cst_5 = arith.constant dense<0x7F800000> : vector<104xf32>
    %5 = vector.multi_reduction <minimumf>, %4, %cst_5 [1] : vector<104x128xf32> to vector<104xf32>
    %6 = vector.shape_cast %5 : vector<104xf32> to vector<104x1xf32>
    %cst_6 = arith.constant 0.000000e+00 : f32
    %7 = vector.broadcast %cst_6 : f32 to vector<104x1xf32>
    %8 = arith.maximumf %6, %7 : vector<104x1xf32>
    %c0_i32 = arith.constant 0 : i32
    %9 = arith.cmpi eq, %arg2, %c0_i32 : i32
    %10 = arith.extui %9 : i1 to i32
    %c0_i32_7 = arith.constant 0 : i32
    %11 = arith.cmpi ne, %10, %c0_i32_7 : i32
    scf.if %11 {
      %c0_16 = arith.constant 0 : index
      %c0_17 = arith.constant 0 : index
      %c0_18 = arith.constant 0 : index
      %21 = vector.load %arg5[%c0_16, %c0_17, %c0_18] : memref<1x104x1xf32, #tpu.memory_space<vmem>>, vector<1x104x1xf32>
      %22 = vector.shape_cast %21 : vector<1x104x1xf32> to vector<104x1xf32>
      %23 = vector.shape_cast %8 : vector<104x1xf32> to vector<1x104x1xf32>
      tpu.vector_store %arg5[%c0_16, %c0_17, %c0_18], %23 {strides = array<i32>} : memref<1x104x1xf32, #tpu.memory_space<vmem>>, vector<1x104x1xf32>,
    } else {
    }
    %c0_i32_8 = arith.constant 0 : i32
    %12 = arith.cmpi sgt, %arg2, %c0_i32_8 : i32
    %13 = arith.extui %12 : i1 to i32
    %c0_i32_9 = arith.constant 0 : i32
    %14 = arith.cmpi ne, %13, %c0_i32_9 : i32
    scf.if %14 {
      %c0_16 = arith.constant 0 : index
      %c0_17 = arith.constant 0 : index
      %c0_18 = arith.constant 0 : index
      %21 = vector.load %arg5[%c0_16, %c0_17, %c0_18] : memref<1x104x1xf32, #tpu.memory_space<vmem>>, vector<1x104x1xf32>
      %22 = vector.shape_cast %21 : vector<1x104x1xf32> to vector<104x1xf32>
      %23 = arith.minimumf %22, %8 : vector<104x1xf32>
      %c0_19 = arith.constant 0 : index
      %c0_20 = arith.constant 0 : index
      %c0_21 = arith.constant 0 : index
      %24 = vector.load %arg5[%c0_19, %c0_20, %c0_21] : memref<1x104x1xf32, #tpu.memory_space<vmem>>, vector<1x104x1xf32>
      %25 = vector.shape_cast %24 : vector<1x104x1xf32> to vector<104x1xf32>
      %26 = vector.shape_cast %23 : vector<104x1xf32> to vector<1x104x1xf32>
      tpu.vector_store %arg5[%c0_19, %c0_20, %c0_21], %26 {strides = array<i32>} : memref<1x104x1xf32, #tpu.memory_space<vmem>>, vector<1x104x1xf32>,
    } else {
    }
    %cst_10 = arith.constant dense<0x7F800000> : vector<128xf32>
    %15 = vector.multi_reduction <minimumf>, %4, %cst_10 [0] : vector<104x128xf32> to vector<128xf32>
    %cst_11 = arith.constant 0.000000e+00 : f32
    %16 = vector.broadcast %cst_11 : f32 to vector<128xf32>
    %17 = arith.maximumf %15, %16 : vector<128xf32>
    %c0_12 = arith.constant 0 : index
    %c0_13 = arith.constant 0 : index
    %c0_14 = arith.constant 0 : index
    %c0_15 = arith.constant 0 : index
    %18 = vector.load %arg6[%c0_12, %c0_13, %c0_14, %c0_15] : memref<1x1x1x128xf32, #tpu.memory_space<vmem>>, vector<1x1x1x128xf32>
    %19 = vector.shape_cast %18 : vector<1x1x1x128xf32> to vector<128xf32>
    %20 = vector.shape_cast %17 : vector<128xf32> to vector<1x1x1x128xf32>
    tpu.vector_store %arg6[%c0_12, %c0_13, %c0_14, %c0_15], %20 {strides = array<i32>} : memref<1x1x1x128xf32, #tpu.memory_space<vmem>>, vector<1x1x1x128xf32>,
    return
  }
  func.func @transform_0(%arg0: i32, %arg1: i32, %arg2: i32) -> (i32, i32, i32) {
    %c0_i32 = arith.constant 0 : i32
    %c0_i32_0 = arith.constant 0 : i32
    return %arg0, %arg1, %c0_i32 : i32, i32, i32
  }
  func.func @transform_1(%arg0: i32, %arg1: i32, %arg2: i32) -> (i32, i32, i32) {
    %c0_i32 = arith.constant 0 : i32
    %c0_i32_0 = arith.constant 0 : i32
    return %arg0, %c0_i32, %arg2 : i32, i32, i32
  }
  func.func @transform_2(%arg0: i32, %arg1: i32, %arg2: i32) -> (i32, i32, i32) {
    %c0_i32 = arith.constant 0 : i32
    %c0_i32_0 = arith.constant 0 : i32
    return %arg0, %arg1, %c0_i32 : i32, i32, i32
  }
  func.func @transform_3(%arg0: i32, %arg1: i32, %arg2: i32) -> (i32, i32, i32, i32) {
    %c0_i32 = arith.constant 0 : i32
    %c0_i32_0 = arith.constant 0 : i32
    return %arg0, %arg1, %c0_i32, %arg2 : i32, i32, i32, i32
  }
}

</mosaic_0001>

<bundles_post_ra>
// kernel: tpu_custom_call.1
= control target key start
LH: loop header
LB: loop body
LE: loop exit
PB: predicated region body
PF: predicated region fallthrough
CT: control target
= control target key end

     0   :  { %9 = vsyncpa [#allocation3], 0  ;;  %s1631_s0 = inlined_call_operand.vmem [shape: f32[2,104,8], index: 0, kind: input, shape index: {}]   ;;  %s1632_s1 = inlined_call_operand.vmem [shape: f32[2,8,128], index: 1, kind: input, shape index: {}]   ;;  %s1633_s2 = inlined_call_operand.vmem [shape: f32[2,104,1], index: 2, kind: output, shape index: {0}]   ;;  %s1634_s3 = inlined_call_operand.hbm [shape: f32[2,1,1,128], index: 3, kind: output, shape index: {1}]  }
   0x1   :  { %11 = vsyncpa [#allocation3 + $0x1], 0  ;;  %s1274_s12 = smov 0   ;;  %s1276_s13 = smov 0  }
   0x2   :  { %s1278_s14 = smov 0   ;;  %s1280_s15 = smov 0  }
   0x3   :  { %s1282_s16 = smov 0   ;;  %s1284_s17 = smov 0  }
   0x4 LB: > { %s1106_s18 = sadd.s32 4294967295, %s1252_s17   ;;  %s1107_s19 = sadd.s32 4294967294, %s1252_s17   ;;  %s1252_s17 = sphi %s1284_s17, %s17_s17   ;;  %s1248_s16 = sphi %s1282_s16, %s1641_s16   ;;  %s1244_s15 = sphi %s1280_s15, %s1640_s15   ;;  %s1240_s14 = sphi %s1278_s14, %s1639_s14   ;;  %s1236_s13 = sphi %s1276_s13, %s1638_s13   ;;  %s1232_s12 = sphi %s1274_s12, %s1637_s12  }
   0x5   : > { %s36_s20 = sadd.s32 1, %s1248_s16  ;;  %s131_s21 = sadd.s32 1, %s1240_s14 }
   0x6   : > { %p38_p0 = scmp.ge.s32.totalorder %s36_s20, 2  ;;  %p141_p1 = scmp.ne.s32.totalorder %s1240_s14, %s1236_s13 }
   0x7   : > { %p142_p2 = scmp.eq.s32.totalorder %s1106_s18, 1  ;;  %p147_p3 = scmp.ne.s32.totalorder %s1236_s13, %s1232_s12 }
   0x8   : > { %s1643_s20 = smov (%p38_p0, %s36_s20), 0  ;;  %p148_p5 = scmp.eq.s32.totalorder %s1107_s19, 1 }
   0x9   : > { %p1314_p4 = por %p142_p2, %p141_p1  ;;  %s124_s23 = ssub.s32 %s1248_s16, %s1643_s20 }
   0xa   : > { %p1110_p6 = scmp.ge.s32.totalorder %s1252_s17, 1  ;;  %p129_p7 = scmp.eq.s32.totalorder %s124_s23, 0 }
   0xb   : > { %p1321_p8 = por %p148_p5, %p147_p3  ;;  %p189_p9 = scmp.lt.s32.totalorder %s1252_s17, 3 }
   0xc   : > { %s1327_s25 = scalar_select %p129_p7, %s1240_s14, %s131_s21  }
   0xd   : > { %p190_p10 = pnand %p1110_p6, %p189_p9 }
   0xe   : > { %p233_p11 = scmp.lt.s32.totalorder (!%p190_p10), %s1244_s15, 1  ;;  %s230_s8 = sand.u32 (!%p190_p10), 1, %s1236_s13  }
   0xf   : > { %193 = sbr.rel (%p190_p10) target bundleno = 440 (0x1b8), region = 28  ;;  %s976_s11 = scalar_lea.hbm (!%p190_p10), %s1634_s3, %s1244_s15 }
  0x10   : > { %s231_s18 = scalar_lea.vmem (!%p190_p10), [#allocation2], %s230_s8  ;;  %s980_s21 = sshll.u32 (!%p190_p10), %s976_s11, 4  ;;  %s981_s21 = int_to_ptr.hbm [resolvable:$true] %s980_s21 }
  0x11   : > { %s978_s19 = sshll.u32 (!%p190_p10), %s231_s18, 4  ;;  %s1188_s30 = sshra.s32 (!%p190_p10), %s981_s21, 4  ;;  %s979_s19 = int_to_ptr.vmem [resolvable:$true] %s978_s19  ;;  %s1189_s30 = int_to_ptr.hbm [resolvable:$true] %s1188_s30 }
  0x12   : > { %p1195_p1 = scmp.lt.s32.totalorder (!%p190_p10), %s1189_s30, %s1634_s3 }
  0x14   : > { %s1331_s26 = scalar_select %p233_p11, %s1244_s15, 1  ;;  %vm273_vm0 = vcmask 64512   ;;  %vm874_vm1 = vcmask 7168  }
  0x15   : > { %s962_s15 = scalar_lea.sflag [#allocation3], %s230_s8 }
  0x16   : > { %s1118_s27 = smul.u32 104, %s1331_s26  ;;  %s1112_s28 = sshll.u32 %s1331_s26, 3 }
  0x17   : > { %s248_s4 = scalar_lea.vmem %s1632_s1, %s1112_s28  ;;  %s1194_s26 = scalar_lea.hbm %s1634_s3, 2 }
  0x18   : > { %s1343_s7 = scalar_lea.vmem %s1631_s0, %s1118_s27  ;;  %v272_v0 = vld [vmem:[%s248_s4] sm:$0xff]  ;;  %s1571_s29 = scalar_lea.vmem %s1633_s2, %s1118_s27 }
  0x19   : > { %v328_v1 = vand.u32 4294901760, %v272_v0  ;;  %v266_v2 = vld [vmem:[%s1343_s7 + $0x38] sm:$0xff]  ;;  %v259_v3 = vld [vmem:[%s1343_s7] sm:$0xff]  ;;  %v260_v8 = vld [vmem:[%s1343_s7 + $0x8] sm:$0xff]  ;;  %s1190_s4 = scalar_lea.hbm %s1189_s30, 1 }
  0x1a   : > { %v267_v4 = vld [vmem:[%s1343_s7 + $0x40] sm:$0xff]  ;;  %v296_v5 = vsel %vm273_vm0, %v266_v2, 0  ;;  %v275_v6 = vsel %vm273_vm0, %v259_v3, 0  ;;  %v268_v9 = vld [vmem:[%s1343_s7 + $0x48] sm:$0xff]  ;;  %v261_v10 = vld [vmem:[%s1343_s7 + $0x10] sm:$0xff]  ;;  %v278_v15 = vsel %vm273_vm0, %v260_v8, 0  ;;  %p1191_p12 = scmp.ne.s32.totalorder %s1189_s30, %s1190_s4  ;;  %p1196_p2 = scmp.lt.s32.totalorder %s1194_s26, %s1190_s4 }
  0x1b   : > { %v299_v7 = vsel %vm273_vm0, %v267_v4, 0  ;;  %1116 = vmatpush.msra.mxu2 %v328_v1  ;;  %v451_v11 = vsub.f32 %v272_v0, %v328_v1  ;;  %v1354_v12 = vand.u32 4294901760, %v296_v5  ;;  %329 = vmatpush.msra.mxu0 %v328_v1  ;;  %v1356_v13 = vand.u32 4294901760, %v275_v6  ;;  %v269_v34 = vld [vmem:[%s1343_s7 + $0x50] sm:$0xff]  ;;  %v262_v37 = vld [vmem:[%s1343_s7 + $0x18] sm:$0xff]  ;;  %v263_v51 = vld [vmem:[%s1343_s7 + $0x20] sm:$0xff] }
  0x1c   : > { %v1358_v14 = vand.u32 4294901760, %v299_v7  ;;  %v302_v16 = vsel %vm273_vm0, %v268_v9, 0  ;;  %v281_v17 = vsel %vm273_vm0, %v261_v10, 0  ;;  %v1372_v22 = vand.u32 4294901760, %v278_v15  ;;  %v270_v50 = vld [vmem:[%s1343_s7 + $0x58] sm:$0xff]  ;;  %v271_v0 = vld [vmem:[%s1343_s7 + $0x60] sm:$0xff]  ;;  %p1192_p13 = pnand %p1191_p12, %p1314_p4  ;;  %p1197_p3 = por %p1196_p2, %p1195_p1 }
  0x1d   : > { %v452_v18 = vand.u32 4294901760, %v451_v11  ;;  %v1364_v19 = vsub.f32 %v296_v5, %v1354_v12  ;;  %526 = vmatpush.msrb.mxu2 %v451_v11  ;;  %v1367_v20 = vsub.f32 %v275_v6, %v1356_v13  ;;  %v1379_v27 = vand.u32 4294901760, %v302_v16 }
  0x1e   : > { %v1370_v21 = vsub.f32 %v299_v7, %v1358_v14  ;;  %v1377_v26 = vsub.f32 %v278_v15, %v1372_v22  ;;  %v1381_v28 = vand.u32 4294901760, %v281_v17  ;;  %v305_v42 = vsel %vm273_vm0, %v269_v34, 0  ;;  %p1193_p0 = pneg %p1192_p13 }
  0x1f   : > { %v453_v23 = vsub.f32 %v451_v11, %v452_v18  ;;  %v388_v24 = vand.u32 4294901760, %v1364_v19  ;;  %v332_v25 = vand.u32 4294901760, %v1367_v20  ;;  %707 = vmatpush.msrb.mxu0 %v452_v18  ;;  %v1396_v38 = vsub.f32 %v302_v16, %v1379_v27 }
  0x20   : > { %v396_v32 = vand.u32 4294901760, %v1370_v21  ;;  %v340_v33 = vand.u32 4294901760, %v1377_v26  ;;  %v1405_v41 = vsub.f32 %v281_v17, %v1381_v28  ;;  %v284_v43 = vsel %vm273_vm0, %v262_v37, 0  ;;  %v265_v17 = vld [vmem:[%s1343_s7 + $0x30] sm:$0xff]  ;;  %p1198_p5 = pnand %p1197_p3, %p1193_p0 }
  0x21   : > { %v454_v29 = vand.u32 4294901760, %v453_v23  ;;  %v389_v30 = vsub.f32 %v1364_v19, %v388_v24  ;;  %v333_v31 = vsub.f32 %v1367_v20, %v332_v25  ;;  %v404_v44 = vand.u32 4294901760, %v1396_v38 }
  0x22   : > { %v397_v39 = vsub.f32 %v1370_v21, %v396_v32  ;;  %v341_v40 = vsub.f32 %v1377_v26, %v340_v33  ;;  %v1410_v45 = vand.u32 4294901760, %v305_v42  ;;  %v348_v48 = vand.u32 4294901760, %v1405_v41 }
  0x23   : > { %1117 = vmatpush.msra.mxu3 %v454_v29  ;;  %v390_v35 = vand.u32 4294901760, %v389_v30  ;;  %455 = vmatpush.msra.mxu1 %v454_v29  ;;  %v334_v36 = vand.u32 4294901760, %v333_v31  ;;  %v1413_v49 = vand.u32 4294901760, %v284_v43  ;;  %v405_v52 = vsub.f32 %v1396_v38, %v404_v44 }
  0x24   : > { %485 = vmatmul.f32.vlgmr.msra.gmra.mxu3 %v1354_v12  ;;  %457 = vmatmul.f32.vlgmr.msra.gmra.mxu1 %v1356_v13  ;;  %v398_v46 = vand.u32 4294901760, %v397_v39  ;;  %v342_v47 = vand.u32 4294901760, %v341_v40  ;;  %v1423_v53 = vsub.f32 %v305_v42, %v1410_v45  ;;  %v349_v54 = vsub.f32 %v1405_v41, %v348_v48 }
  0x25   : > { %391 = vmatmul.f32.vlgmr.msra.gmra.mxu2 %v390_v35  ;;  %335 = vmatmul.f32.vlgmr.msra.gmra.mxu0 %v334_v36  ;;  %v1429_v55 = vsub.f32 %v284_v43, %v1413_v49  ;;  %v308_v56 = vsel %vm273_vm0, %v270_v50, 0  ;;  %v287_v57 = vsel %vm273_vm0, %v263_v51, 0  ;;  %v406_v58 = vand.u32 4294901760, %v405_v52 }
  0x26   : > { %609 = vmatpush.msrb.mxu3 %v328_v1  ;;  %777 = vmatpush.msrb.mxu1 %v328_v1  ;;  %v412_v59 = vand.u32 4294901760, %v1423_v53  ;;  %v350_v60 = vand.u32 4294901760, %v349_v54  ;;  %v1435_v62 = vand.u32 4294901760, %v308_v56  ;;  %v1437_v63 = vand.u32 4294901760, %v287_v57  ;;  %v264_v1 = vld [vmem:[%s1343_s7 + $0x28] sm:$0xff] }
  0x27   : > { %v356_v61 = vand.u32 4294901760, %v1429_v55  ;;  %v311_v6 = vsel %vm273_vm0, %v271_v0, 0  ;;  %v290_v7 = vsel %vm273_vm0, %v264_v1, 0  ;;  %v293_v31 = vsel %vm273_vm0, %v265_v17, 0 }
  0x28   : > { %v413_v2 = vsub.f32 %v1423_v53, %v412_v59  ;;  %v1450_v4 = vsub.f32 %v308_v56, %v1435_v62  ;;  %v363_v5 = vsub.f32 %v287_v57, %v1437_v63  ;;  %v1455_v9 = vand.u32 4294901760, %v311_v6 }
  0x29   : > { %v357_v3 = vsub.f32 %v1429_v55, %v356_v61  ;;  %v370_v16 = vand.u32 4294901760, %v290_v7  ;;  %v378_v39 = vand.u32 4294901760, %v293_v31 }
  0x2a   : > { %v414_v8 = vand.u32 4294901760, %v413_v2  ;;  %v420_v11 = vand.u32 4294901760, %v1450_v4  ;;  %v364_v15 = vand.u32 4294901760, %v363_v5  ;;  %v1462_v18 = vsub.f32 %v311_v6, %v1455_v9 }
  0x2b   : > { %v358_v10 = vand.u32 4294901760, %v357_v3  ;;  %v371_v30 = vsub.f32 %v290_v7, %v370_v16  ;;  %v379_v43 = vsub.f32 %v293_v31, %v378_v39 }
  0x2c   : > { %489 = vmatmul.f32.gmra.mxu3 %v1358_v14  ;;  %461 = vmatmul.f32.gmra.mxu1 %v1372_v22  ;;  %v421_v23 = vsub.f32 %v1450_v4, %v420_v11  ;;  %v365_v29 = vsub.f32 %v363_v5, %v364_v15  ;;  %v428_v34 = vand.u32 4294901760, %v1462_v18 }
  0x2d   : > { %399 = vmatmul.f32.gmra.mxu2 %v398_v46  ;;  %343 = vmatmul.f32.gmra.mxu0 %v342_v47  ;;  %v372_v37 = vand.u32 4294901760, %v371_v30  ;;  %v380_v50 = vand.u32 4294901760, %v379_v43 }
  0x2e   : > { %v422_v35 = vand.u32 4294901760, %v421_v23  ;;  %v366_v36 = vand.u32 4294901760, %v365_v29  ;;  %v429_v40 = vsub.f32 %v1462_v18, %v428_v34 }
  0x2f   : > { %v373_v42 = vsub.f32 %v371_v30, %v372_v37  ;;  %v381_v51 = vsub.f32 %v379_v43, %v380_v50 }
  0x30   : > { %v430_v46 = vand.u32 4294901760, %v429_v40 }
  0x31   : > { %v374_v47 = vand.u32 4294901760, %v373_v42  ;;  %v382_v52 = vand.u32 4294901760, %v381_v51 }
  0x34   : > { %493 = vmatmul.f32.gmra.mxu3 %v1379_v27  ;;  %465 = vmatmul.f32.gmra.mxu1 %v1381_v28 }
  0x35   : > { %407 = vmatmul.f32.gmra.mxu2 %v406_v58  ;;  %351 = vmatmul.f32.gmra.mxu0 %v350_v60 }
  0x3c   : > { %497 = vmatmul.f32.gmra.mxu3 %v1410_v45  ;;  %469 = vmatmul.f32.gmra.mxu1 %v1413_v49 }
  0x3d   : > { %415 = vmatmul.f32.gmra.mxu2 %v414_v8  ;;  %359 = vmatmul.f32.gmra.mxu0 %v358_v10 }
  0x44   : > { %501 = vmatmul.f32.gmra.mxu3 %v1435_v62  ;;  %473 = vmatmul.f32.gmra.mxu1 %v1437_v63 }
  0x45   : > { %423 = vmatmul.f32.gmra.mxu2 %v422_v35  ;;  %367 = vmatmul.f32.gmra.mxu0 %v366_v36 }
  0x4c   : > { %505 = vmatmul.f32.gmra.mxu3 %v1455_v9  ;;  %477 = vmatmul.f32.gmra.mxu1 %v370_v16 }
  0x4d   : > { %431 = vmatmul.f32.gmra.mxu2 %v430_v46  ;;  %375 = vmatmul.f32.gmra.mxu0 %v374_v47 }
  0x54   : > { %481 = vmatmul.f32.gmra.mxu1 %v378_v39  ;;  %613 = vmatmul.f32.vlgmr.msrb.gmra.mxu3 %v332_v25 }
  0x55   : > { %529 = vmatmul.f32.vlgmr.msrb.gmra.mxu2 %v1367_v20  ;;  %383 = vmatmul.f32.gmra.mxu0 %v382_v52 }
  0x5c   : > { %619 = vmatmul.f32.gmra.mxu3 %v340_v33  ;;  %779 = vmatmul.f32.vlgmr.msrb.gmra.mxu1 %v1356_v13 }
  0x5d   : > { %534 = vmatmul.f32.gmra.mxu2 %v1377_v26  ;;  %709 = vmatmul.f32.vlgmr.msrb.gmra.mxu0 %v1356_v13 }
  0x64   : > { %625 = vmatmul.f32.gmra.mxu3 %v348_v48  ;;  %783 = vmatmul.f32.gmra.mxu1 %v1372_v22 }
  0x65   : > { %539 = vmatmul.f32.gmra.mxu2 %v1405_v41  ;;  %713 = vmatmul.f32.gmra.mxu0 %v1372_v22 }
  0x6c   : > { %631 = vmatmul.f32.gmra.mxu3 %v356_v61  ;;  %787 = vmatmul.f32.gmra.mxu1 %v1381_v28 }
  0x6d   : > { %544 = vmatmul.f32.gmra.mxu2 %v1429_v55  ;;  %717 = vmatmul.f32.gmra.mxu0 %v1381_v28 }
  0x74   : > { %637 = vmatmul.f32.gmra.mxu3 %v364_v15  ;;  %791 = vmatmul.f32.gmra.mxu1 %v1413_v49 }
  0x75   : > { %549 = vmatmul.f32.gmra.mxu2 %v363_v5  ;;  %721 = vmatmul.f32.gmra.mxu0 %v1413_v49 }
  0x7c   : > { %643 = vmatmul.f32.gmra.mxu3 %v372_v37  ;;  %795 = vmatmul.f32.gmra.mxu1 %v1437_v63 }
  0x7d   : > { %554 = vmatmul.f32.gmra.mxu2 %v371_v30  ;;  %725 = vmatmul.f32.gmra.mxu0 %v1437_v63 }
  0x84   : > { %649 = vmatmul.f32.gmra.mxu3 %v380_v50  ;;  %799 = vmatmul.f32.gmra.mxu1 %v370_v16 }
  0x85   : > { %559 = vmatmul.f32.gmra.mxu2 %v379_v43  ;;  %729 = vmatmul.f32.gmra.mxu0 %v370_v16 }
  0x8c   : > { %655 = vmatmul.f32.gmra.mxu3 %v388_v24  ;;  %803 = vmatmul.f32.gmra.mxu1 %v378_v39 }
  0x8d   : > { %564 = vmatmul.f32.gmra.mxu2 %v1364_v19  ;;  %733 = vmatmul.f32.gmra.mxu0 %v378_v39 }
  0x94   : > { %661 = vmatmul.f32.gmra.mxu3 %v396_v32  ;;  %807 = vmatmul.f32.gmra.mxu1 %v1354_v12 }
  0x95   : > { %569 = vmatmul.f32.gmra.mxu2 %v1370_v21  ;;  %737 = vmatmul.f32.gmra.mxu0 %v1354_v12 }
  0x9c   : > { %667 = vmatmul.f32.gmra.mxu3 %v404_v44  ;;  %811 = vmatmul.f32.gmra.mxu1 %v1358_v14 }
  0x9d   : > { %574 = vmatmul.f32.gmra.mxu2 %v1396_v38  ;;  %741 = vmatmul.f32.gmra.mxu0 %v1358_v14 }
  0xa1   : > { %v458_v13 = vpop.f32.mrf.mxu1 }
  0xa2   : > { %v336_v19 = vpop.f32.mrf.mxu0 }
  0xa3   : > { %v459_v1 = vadd.f32 %v458_v13, %v336_v19 }
  0xa4   : > { %673 = vmatmul.f32.gmra.mxu3 %v412_v59  ;;  %815 = vmatmul.f32.gmra.mxu1 %v1379_v27 }
  0xa5   : > { %579 = vmatmul.f32.gmra.mxu2 %v1423_v53  ;;  %745 = vmatmul.f32.gmra.mxu0 %v1379_v27 }
  0xa7   : > { %v486_v12 = vpop.f32.mrf.mxu3 }
  0xa8   : > { %v392_v20 = vpop.f32.mrf.mxu2 }
  0xa9   : > { %v1515_v21 = vadd.f32 %v486_v12, %v392_v20  ;;  %v462_v22 = vpop.f32.mrf.mxu1 }
  0xaa   : > { %v344_v24 = vpop.f32.mrf.mxu0 }
  0xac   : > { %679 = vmatmul.f32.gmra.mxu3 %v420_v11  ;;  %819 = vmatmul.f32.gmra.mxu1 %v1410_v45 }
  0xad   : > { %584 = vmatmul.f32.gmra.mxu2 %v1450_v4  ;;  %749 = vmatmul.f32.gmra.mxu0 %v1410_v45 }
  0xaf   : > { %v490_v14 = vpop.f32.mrf.mxu3 }
  0xb0   : > { %v400_v25 = vpop.f32.mrf.mxu2 }
  0xb1   : > { %v1522_v26 = vadd.f32 %v490_v14, %v400_v25  ;;  %v466_v27 = vpop.f32.mrf.mxu1 }
  0xb2   : > { %v352_v28 = vpop.f32.mrf.mxu0 }
  0xb3   : > { %v467_v30 = vadd.f32 %v466_v27, %v352_v28 }
  0xb4   : > { %685 = vmatmul.f32.gmra.mxu3 %v428_v34  ;;  %823 = vmatmul.f32.gmra.mxu1 %v1435_v62 }
  0xb5   : > { %589 = vmatmul.f32.gmra.mxu2 %v1462_v18  ;;  %753 = vmatmul.f32.gmra.mxu0 %v1435_v62 }
  0xb7   : > { %v494_v32 = vpop.f32.mrf.mxu3 }
  0xb8   : > { %v408_v33 = vpop.f32.mrf.mxu2 }
  0xb9   : > { %v1529_v38 = vadd.f32 %v494_v32, %v408_v33  ;;  %v470_v41 = vpop.f32.mrf.mxu1 }
  0xba   : > { %v360_v44 = vpop.f32.mrf.mxu0 }
  0xbb   : > { %v471_v43 = vadd.f32 %v470_v41, %v360_v44 }
  0xbc   : > { %827 = vmatmul.f32.gmra.mxu1 %v1455_v9 }
  0xbd   : > { %757 = vmatmul.f32.gmra.mxu0 %v1455_v9  ;;  %v463_v9 = vadd.f32 %v462_v22, %v344_v24 }
  0xbf   : > { %v498_v45 = vpop.f32.mrf.mxu3 }
  0xc0   : > { %v416_v48 = vpop.f32.mrf.mxu2 }
  0xc1   : > { %v1533_v49 = vadd.f32 %v498_v45, %v416_v48  ;;  %v474_v53 = vpop.f32.mrf.mxu1 }
  0xc2   : > { %v368_v54 = vpop.f32.mrf.mxu0 }
  0xc3   : > { %v475_v20 = vadd.f32 %v474_v53, %v368_v54 }
  0xc7   : > { %v502_v55 = vpop.f32.mrf.mxu3 }
  0xc8   : > { %v424_v56 = vpop.f32.mrf.mxu2 }
  0xc9   : > { %v1535_v57 = vadd.f32 %v502_v55, %v424_v56  ;;  %v478_v58 = vpop.f32.mrf.mxu1 }
  0xca   : > { %v376_v59 = vpop.f32.mrf.mxu0 }
  0xcb   : > { %v479_v41 = vadd.f32 %v478_v58, %v376_v59 }
  0xcf   : > { %v506_v60 = vpop.f32.mrf.mxu3 }
  0xd0   : > { %v432_v61 = vpop.f32.mrf.mxu2 }
  0xd1   : > { %v1537_v62 = vadd.f32 %v506_v60, %v432_v61  ;;  %v482_v63 = vpop.f32.mrf.mxu1 }
  0xd2   : > { %v384_v0 = vpop.f32.mrf.mxu0 }
  0xd3   : > { %v483_v61 = vadd.f32 %v482_v63, %v384_v0 }
  0xd7   : > { %v614_v2 = vpop.f32.mrf.mxu3 }
  0xd8   : > { %v530_v3 = vpop.f32.mrf.mxu2 }
  0xd9   : > { %v531_v4 = vadd.f32 %v530_v3, %v459_v1  ;;  %v780_v5 = vpop.f32.mrf.mxu1 }
  0xda   : > { %v710_v6 = vpop.f32.mrf.mxu0 }
  0xdb   : > { %v615_v7 = vadd.f32 %v614_v2, %v531_v4 }
  0xdd   : > { %v711_v8 = vadd.f32 %v710_v6, %v615_v7 }
  0xdf   : > { %v1539_v10 = vadd.f32 %v780_v5, %v711_v8  ;;  %v620_v11 = vpop.f32.mrf.mxu3 }
  0xe0   : > { %v535_v15 = vpop.f32.mrf.mxu2 }
  0xe1   : > { %v536_v16 = vadd.f32 %v535_v15, %v463_v9  ;;  %831 = vmin.xlane.f32.xlu0 %v1539_v10  ;;  %v784_v17 = vpop.f32.mrf.mxu1 }
  0xe2   : > { %v714_v18 = vpop.f32.mrf.mxu0 }
  0xe3   : > { %v621_v23 = vadd.f32 %v620_v11, %v536_v16 }
  0xe5   : > { %v715_v29 = vadd.f32 %v714_v18, %v621_v23 }
  0xe7   : > { %v1542_v31 = vadd.f32 %v784_v17, %v715_v29  ;;  %v626_v34 = vpop.f32.mrf.mxu3 }
  0xe8   : > { %v540_v35 = vpop.f32.mrf.mxu2 }
  0xe9   : > { %v541_v36 = vadd.f32 %v540_v35, %v467_v30  ;;  %833 = vmin.xlane.f32.xlu0 %v1542_v31  ;;  %v788_v37 = vpop.f32.mrf.mxu1 }
  0xea   : > { %v718_v39 = vpop.f32.mrf.mxu0 }
  0xeb   : > { %v627_v40 = vadd.f32 %v626_v34, %v541_v36 }
  0xed   : > { %v719_v42 = vadd.f32 %v718_v39, %v627_v40 }
  0xef   : > { %v1545_v46 = vadd.f32 %v788_v37, %v719_v42  ;;  %v632_v47 = vpop.f32.mrf.mxu3 }
  0xf0   : > { %v545_v50 = vpop.f32.mrf.mxu2 }
  0xf1   : > { %v546_v51 = vadd.f32 %v545_v50, %v471_v43  ;;  %835 = vmin.xlane.f32.xlu1 %v1545_v46  ;;  %v792_v52 = vpop.f32.mrf.mxu1 }
  0xf2   : > { %v722_v13 = vpop.f32.mrf.mxu0 }
  0xf3   : > { %v633_v19 = vadd.f32 %v632_v47, %v546_v51 }
  0xf5   : > { %v723_v12 = vadd.f32 %v722_v13, %v633_v19 }
  0xf7   : > { %v1548_v22 = vadd.f32 %v792_v52, %v723_v12  ;;  %v638_v24 = vpop.f32.mrf.mxu3 }
  0xf8   : > { %v550_v14 = vpop.f32.mrf.mxu2 }
  0xf9   : > { %v551_v25 = vadd.f32 %v550_v14, %v475_v20  ;;  %837 = vmin.xlane.f32.xlu1 %v1548_v22  ;;  %v796_v27 = vpop.f32.mrf.mxu1 }
  0xfa   : > { %v726_v28 = vpop.f32.mrf.mxu0 }
  0xfb   : > { %v639_v32 = vadd.f32 %v638_v24, %v551_v25 }
  0xfd   : > { %v727_v33 = vadd.f32 %v726_v28, %v639_v32 }
  0xff   : > { %v797_v44 = vadd.f32 %v796_v27, %v727_v33  ;;  %v644_v45 = vpop.f32.mrf.mxu3 }
 0x100   : > { %v555_v48 = vpop.f32.mrf.mxu2 }
 0x101   : > { %v556_v55 = vadd.f32 %v555_v48, %v479_v41  ;;  %839 = vmin.xlane.f32.xlu2 %v797_v44  ;;  %v800_v56 = vpop.f32.mrf.mxu1  ;;  %v932_v39 = vmin.f32 %v1539_v10, %v797_v44 }
 0x102   : > { %v730_v60 = vpop.f32.mrf.mxu0 }
 0x103   : > { %v645_v53 = vadd.f32 %v644_v45, %v556_v55 }
 0x105   : > { %v731_v54 = vadd.f32 %v730_v60, %v645_v53 }
 0x107   : > { %v801_v1 = vadd.f32 %v800_v56, %v731_v54  ;;  %v650_v2 = vpop.f32.mrf.mxu3 }
 0x108   : > { %v560_v3 = vpop.f32.mrf.mxu2 }
 0x109   : > { %v561_v4 = vadd.f32 %v560_v3, %v483_v61  ;;  %841 = vmin.xlane.f32.xlu2 %v801_v1  ;;  %v804_v5 = vpop.f32.mrf.mxu1 }
 0x10a   : > { %v734_v6 = vpop.f32.mrf.mxu0 }
 0x10b   : > { %v651_v7 = vadd.f32 %v650_v2, %v561_v4 }
 0x10d   : > { %v735_v8 = vadd.f32 %v734_v6, %v651_v7 }
 0x10f   : > { %v805_v58 = vadd.f32 %v804_v5, %v735_v8  ;;  %v656_v59 = vpop.f32.mrf.mxu3 }
 0x110   : > { %v565_v9 = vpop.f32.mrf.mxu2 }
 0x111   : > { %v566_v11 = vadd.f32 %v565_v9, %v1515_v21  ;;  %843 = vmin.xlane.f32.xlu0 %v805_v58  ;;  %v808_v15 = vpop.f32.mrf.mxu1 }
 0x112   : > { %v738_v16 = vpop.f32.mrf.mxu0 }
 0x113   : > { %v657_v17 = vadd.f32 %v656_v59, %v566_v11 }
 0x115   : > { %v739_v18 = vadd.f32 %v738_v16, %v657_v17 }
 0x117   : > { %v809_v63 = vadd.f32 %v808_v15, %v739_v18  ;;  %v662_v0 = vpop.f32.mrf.mxu3 }
 0x118   : > { %v570_v23 = vpop.f32.mrf.mxu2 }
 0x119   : > { %v935_v29 = vmin.f32 %v1548_v22, %v809_v63  ;;  %v571_v30 = vadd.f32 %v570_v23, %v1522_v26  ;;  %845 = vmin.xlane.f32.xlu1 %v809_v63  ;;  %v812_v34 = vpop.f32.mrf.mxu1  ;;  %v933_v26 = vmin.f32 %v1542_v31, %v801_v1 }
 0x11a   : > { %v742_v35 = vpop.f32.mrf.mxu0 }
 0x11b   : > { %v663_v36 = vadd.f32 %v662_v0, %v571_v30 }
 0x11d   : > { %v743_v37 = vadd.f32 %v742_v35, %v663_v36 }
 0x11f   : > { %v813_v21 = vadd.f32 %v812_v34, %v743_v37  ;;  %v668_v40 = vpop.f32.mrf.mxu3 }
 0x120   : > { %v575_v42 = vpop.f32.mrf.mxu2 }
 0x121   : > { %v936_v43 = vmin.f32 %v932_v39, %v813_v21  ;;  %v576_v47 = vadd.f32 %v575_v42, %v1529_v38  ;;  %847 = vmin.xlane.f32.xlu2 %v813_v21  ;;  %v816_v50 = vpop.f32.mrf.mxu1  ;;  %v934_v38 = vmin.f32 %v1545_v46, %v805_v58 }
 0x122   : > { %v746_v51 = vpop.f32.mrf.mxu0 }
 0x123   : > { %v669_v52 = vadd.f32 %v668_v40, %v576_v47 }
 0x125   : > { %v747_v13 = vadd.f32 %v746_v51, %v669_v52 }
 0x127   : > { %v817_v19 = vadd.f32 %v816_v50, %v747_v13  ;;  %v674_v12 = vpop.f32.mrf.mxu3 }
 0x128   : > { %v580_v20 = vpop.f32.mrf.mxu2 }
 0x129   : > { %v937_v22 = vmin.f32 %v933_v26, %v817_v19  ;;  %v581_v24 = vadd.f32 %v580_v20, %v1533_v49  ;;  %849 = vmin.xlane.f32.xlu0 %v817_v19  ;;  %v820_v10 = vpop.f32.mrf.mxu1 }
 0x12a   : > { %v750_v14 = vpop.f32.mrf.mxu0 }
 0x12b   : > { %v675_v25 = vadd.f32 %v674_v12, %v581_v24 }
 0x12d   : > { %v751_v27 = vadd.f32 %v750_v14, %v675_v25 }
 0x12f   : > { %v821_v28 = vadd.f32 %v820_v10, %v751_v27  ;;  %v680_v32 = vpop.f32.mrf.mxu3 }
 0x130   : > { %v585_v33 = vpop.f32.mrf.mxu2 }
 0x131   : > { %v938_v41 = vmin.f32 %v934_v38, %v821_v28  ;;  %v586_v44 = vadd.f32 %v585_v33, %v1535_v57  ;;  %851 = vmin.xlane.f32.xlu1 %v821_v28  ;;  %v824_v45 = vpop.f32.mrf.mxu1 }
 0x132   : > { %v754_v31 = vpop.f32.mrf.mxu0 }
 0x133   : > { %v681_v48 = vadd.f32 %v680_v32, %v586_v44 }
 0x135   : > { %v755_v55 = vadd.f32 %v754_v31, %v681_v48 }
 0x137   : > { %v825_v56 = vadd.f32 %v824_v45, %v755_v55  ;;  %v686_v60 = vpop.f32.mrf.mxu3 }
 0x138   : > { %v590_v49 = vpop.f32.mrf.mxu2 }
 0x139   : > { %v939_v53 = vmin.f32 %v935_v29, %v825_v56  ;;  %v591_v54 = vadd.f32 %v590_v49, %v1537_v62  ;;  %853 = vmin.xlane.f32.xlu2 %v825_v56  ;;  %v828_v2 = vpop.f32.mrf.mxu1 }
 0x13a   : > { %v758_v46 = vpop.f32.mrf.mxu0 }
 0x13b   : > { %v942_v61 = vmin.f32 %v938_v41, %v939_v53  ;;  %v687_v1 = vadd.f32 %v686_v60, %v591_v54 }
 0x13d   : > { %v759_v3 = vadd.f32 %v758_v46, %v687_v1 }
 0x13f   : > { %v829_v57 = vadd.f32 %v828_v2, %v759_v3 }
 0x141   : > { %v940_v4 = vmin.f32 %v936_v43, %v829_v57  ;;  %855 = vmin.xlane.f32.xlu0 %v829_v57 }
 0x143   : > { %v941_v5 = vmin.f32 %v940_v4, %v937_v22 }
 0x145   : > { %v943_v6 = vmin.f32 %v941_v5, %v942_v61 }
 0x147   : > { %v944_v7 = vrot.slane %v943_v6, 4 }
 0x149   : > { %v945_v8 = vmin.f32 %v943_v6, %v944_v7 }
 0x14b   : > { %v946_v58 = vrot.slane %v945_v8, 2 }
 0x14d   : > { %v947_v59 = vmin.f32 %v945_v8, %v946_v58 }
 0x14f   : > { %v948_v62 = vrot.slane %v947_v59, 1 }
 0x151   : > { %v949_v9 = vmin.f32 %v947_v59, %v948_v62 }
 0x153   : > { %v950_v11 = vmax.f32 %v949_v9, 0.0 }
 0x154   : > { %v832_v15 = vpop.xlane.xlu0 %831 }
 0x155   : > { %v857_v16 = vmax.f32 %v832_v15, 0.0  ;;  %951 = vst [vmem:[%s231_s18] sm:$0x1] %v950_v11 }
 0x156   : > { %1201 = shalt.err (!%p1198_p5)
}
 0x157   : > { %1119 = dma.vmem_to_hbm [thread:$0]  (%p1314_p4), %s979_s19, 16, %s981_s21, %s962_s15   ;;  %875 = vst.msk [vmem:[%s1571_s29] sm:$0xff] %vm874_vm1, %v857_v16 }
 0x15c   : > { %v834_v17 = vpop.xlane.xlu0 %833 }
 0x15d   : > { %v858_v18 = vmax.f32 %v834_v17, 0.0 }
 0x15f   : > { %876 = vst.msk [vmem:[%s1571_s29 + $0x8] sm:$0xff] %vm874_vm1, %v858_v18 }
 0x164   : > { %v836_v63 = vpop.xlane.xlu1 %835 }
 0x165   : > { %v859_v0 = vmax.f32 %v836_v63, 0.0 }
 0x167   : > { %877 = vst.msk [vmem:[%s1571_s29 + $0x10] sm:$0xff] %vm874_vm1, %v859_v0 }
 0x16c   : > { %v838_v23 = vpop.xlane.xlu1 %837 }
 0x16d   : > { %v860_v29 = vmax.f32 %v838_v23, 0.0 }
 0x16f   : > { %878 = vst.msk [vmem:[%s1571_s29 + $0x18] sm:$0xff] %vm874_vm1, %v860_v29 }
 0x174   : > { %v840_v30 = vpop.xlane.xlu2 %839 }
 0x175   : > { %v861_v34 = vmax.f32 %v840_v30, 0.0 }
 0x177   : > { %879 = vst.msk [vmem:[%s1571_s29 + $0x20] sm:$0xff] %vm874_vm1, %v861_v34 }
 0x17c   : > { %v842_v35 = vpop.xlane.xlu2 %841 }
 0x17d   : > { %v862_v36 = vmax.f32 %v842_v35, 0.0 }
 0x17f   : > { %880 = vst.msk [vmem:[%s1571_s29 + $0x28] sm:$0xff] %vm874_vm1, %v862_v36 }
 0x184   : > { %v844_v37 = vpop.xlane.xlu0 %843 }
 0x185   : > { %v863_v39 = vmax.f32 %v844_v37, 0.0 }
 0x187   : > { %881 = vst.msk [vmem:[%s1571_s29 + $0x30] sm:$0xff] %vm874_vm1, %v863_v39 }
 0x18c   : > { %v846_v21 = vpop.xlane.xlu1 %845 }
 0x18d   : > { %v864_v40 = vmax.f32 %v846_v21, 0.0 }
 0x18f   : > { %882 = vst.msk [vmem:[%s1571_s29 + $0x38] sm:$0xff] %vm874_vm1, %v864_v40 }
 0x194   : > { %v848_v42 = vpop.xlane.xlu2 %847 }
 0x195   : > { %v865_v43 = vmax.f32 %v848_v42, 0.0 }
 0x197   : > { %883 = vst.msk [vmem:[%s1571_s29 + $0x40] sm:$0xff] %vm874_vm1, %v865_v43 }
 0x19c   : > { %v850_v47 = vpop.xlane.xlu0 %849 }
 0x19d   : > { %v866_v50 = vmax.f32 %v850_v47, 0.0 }
 0x19f   : > { %884 = vst.msk [vmem:[%s1571_s29 + $0x48] sm:$0xff] %vm874_vm1, %v866_v50 }
 0x1a4   : > { %v852_v51 = vpop.xlane.xlu1 %851 }
 0x1a5   : > { %v867_v52 = vmax.f32 %v852_v51, 0.0 }
 0x1a7   : > { %885 = vst.msk [vmem:[%s1571_s29 + $0x50] sm:$0xff] %vm874_vm1, %v867_v52 }
 0x1ac   : > { %v854_v13 = vpop.xlane.xlu2 %853 }
 0x1ad   : > { %v868_v26 = vmax.f32 %v854_v13, 0.0 }
 0x1af   : > { %886 = vst.msk [vmem:[%s1571_s29 + $0x58] sm:$0xff] %vm874_vm1, %v868_v26 }
 0x1b4   : > { %v856_v19 = vpop.xlane.xlu0 %855 }
 0x1b5   : > { %v869_v12 = vmax.f32 %v856_v19, 0.0 }
 0x1b7   : > { %887 = vst.msk [vmem:[%s1571_s29 + $0x60] sm:$0xff] %vm874_vm1, %v869_v12 }
 0x1b8 PF: > { %p1125_p4 = scmp.ge.s32.totalorder %s1252_s17, 2  ;;  %s1004_s22 = sand.u32 1, %s1232_s12  }
 0x1b9   : > { %s1005_s27 = scalar_lea.sflag [#allocation3], %s1004_s22 }
 0x1ba   : > { %p1122_p6 = pnand %p1125_p4, %p1321_p8 }
 0x1bc   : > { %p1123_p7 = pneg %p1122_p6 }
 0x1be   : > { %1227 = dma.done.wait (%p1123_p7), %s1005_s27, 16  }
 0x1bf   : > { %1229 = vsyncadd (%p1123_p7), %s1005_s27, 4294967280  ;;  %s17_s17 = sadd.s32 1, %s1252_s17   ;;  %s1637_s12 = smov %s1236_s13 }
 0x1c0   : > { %p14_p9 = scmp.ge.s32.totalorder %s17_s17, 4   ;;  %s1638_s13 = smov %s1240_s14 }
 0x1c1   : > { %s1639_s14 = smov %s1327_s25  ;;  %s1640_s15 = smov %s1248_s16 }
 0x1c2   : > { %s1641_s16 = smov %s1643_s20  ;;  %16 = sbr.rel (!%p14_p9) target bundleno = 4 (0x4), region = 86 }
 0x1c7   :  { %1010 = vsyncpa [#allocation3], 1 }
 0x1c8   :  { %1012 = vsyncpa [#allocation3 + $0x1], 1 }

</bundles_post_ra>
